<compile_context>
chip_gen: v5e
topology: v5e:2x2
jax: 0.10.0
libtpu: 0.0.40
codegen_flags: <defaults>
</compile_context>

<pallas_src>
import functools

import jax
import jax.numpy as jnp
from jax.experimental import pallas as pl
from jax.experimental.pallas import tpu as pltpu


NEG_INF = -1e30  # large finite negative: masked scores -> exp() == 0, no (-inf)-(-inf) NaN


def mha_kernel(x_ref, wqk_ref, wv_ref, o_ref, *, num_heads, key_dim):
    """Sequential residual attention heads for one batch element.

    x_ref   : (1, S, D)   activations (caller dtype)
    wqk_ref : (H, D, 2K)  bf16, fused [w_q * key_dim**-0.5 || w_k]
    wv_ref  : (H, D, D)   bf16, precombined w_v1 @ w_v2
    o_ref   : (1, S, D)
    """
    xa = x_ref[0].astype(jnp.float32)                      # running residual in f32
    S = xa.shape[0]

    # Causal additive bias, computed once and reused by every head.
    row = jax.lax.broadcasted_iota(jnp.int32, (S, S), 0)
    col = jax.lax.broadcasted_iota(jnp.int32, (S, S), 1)
    bias = jnp.where(col > row, NEG_INF, 0.0).astype(jnp.float32)

    # TODO(synk): for long contexts (S >~ 2k) on v7x (64 MiB VMEM), tile the KV axis with
    # online softmax (flash style) instead of materializing the full (S, S) score matrix.
    for hi in range(num_heads):                            # static, unrolled (heads are sequential)
        xb = xa.astype(jnp.bfloat16)                       # bf16 MXU operands, f32 accumulation
        qk = jnp.dot(xb, wqk_ref[hi], preferred_element_type=jnp.float32)   # (S, 2K)
        q = qk[:, :key_dim].astype(jnp.bfloat16)
        k = qk[:, key_dim:].astype(jnp.bfloat16)
        # 1/sqrt(key_dim) is already folded into w_q -> no per-score multiply.
        s = jnp.dot(q, k.T, preferred_element_type=jnp.float32) + bias      # (S, S)

        # Softmax with deferred normalization.
        p = jnp.exp(s - jnp.max(s, axis=-1, keepdims=True))
        l = jnp.sum(p, axis=-1, keepdims=True)

        v = jnp.dot(xb, wv_ref[hi], preferred_element_type=jnp.float32)     # (S, D)
        acc = jnp.dot(p.astype(jnp.bfloat16), v.astype(jnp.bfloat16),
                      preferred_element_type=jnp.float32)                   # (S, D)
        xa = xa + acc * pl.reciprocal(l, approx=True)

    o_ref[0] = xa.astype(o_ref.dtype)


def multi_head_attention(x, params):
    """x: (B, S, D) f32/bf16; params: dict with wq/wk/wv1/wv2 stacked over heads."""
    B, S, D = x.shape
    H, _, K = params["wq"].shape

    # Fold the 1/sqrt(K) scale into w_q and fuse the q/k projections (wider MXU N-dim).
    wqk = jnp.concatenate([params["wq"] * (K ** -0.5), params["wk"]],
                          axis=-1).astype(jnp.bfloat16)                     # (H, D, 2K)
    # Pre-contract the low-rank value factors: (D,K)@(K,D) -> (D,D), full lane fill.
    wv = jnp.einsum("hdk,hke->hde", params["wv1"], params["wv2"]).astype(jnp.bfloat16)

    kernel = functools.partial(mha_kernel, num_heads=H, key_dim=K)
    return pl.pallas_call(
        kernel,
        out_shape=jax.ShapeDtypeStruct((B, S, D), x.dtype),
        grid_spec=pltpu.PrefetchScalarGridSpec(
            num_scalar_prefetch=0,
            grid=(B,),
            in_specs=[
                pl.BlockSpec((1, S, D), lambda b: (b, 0, 0)),       # x, per batch element
                pl.BlockSpec((H, D, 2 * K), lambda b: (0, 0, 0)),   # fused q/k weights (bf16)
                pl.BlockSpec((H, D, D), lambda b: (0, 0, 0)),       # precombined value weights
            ],
            out_specs=pl.BlockSpec((1, S, D), lambda b: (b, 0, 0)),
        ),
        compiler_params=pltpu.CompilerParams(dimension_semantics=("parallel",)),
    )(x, wqk, wv)


def init_params(key, embedding_dim, num_heads):
    """Deterministic synthetic init (xavier-uniform bounds, matching nn.init.xavier_uniform_)."""
    D = embedding_dim
    K = D // num_heads
    ks = jax.random.split(key, 4)

    def xavier(k, shape):
        fan_in, fan_out = shape[-2], shape[-1]
        bound = (6.0 / (fan_in + fan_out)) ** 0.5
        return jax.random.uniform(k, shape, jnp.float32, -bound, bound)

    return {
        "wq": xavier(ks[0], (num_heads, D, K)),
        "wk": xavier(ks[1], (num_heads, D, K)),
        "wv1": xavier(ks[2], (num_heads, D, K)),
        "wv2": xavier(ks[3], (num_heads, K, D)),
    }


def reference_jax(x, params):
    """Pure-JAX f32 reference with the exact PyTorch semantics."""
    H, _, K = params["wq"].shape
    S = x.shape[1]
    mask = jnp.triu(jnp.ones((S, S), bool), 1)
    for hi in range(H):
        q = x @ params["wq"][hi]
        k = x @ params["wk"][hi]
        att = (q @ jnp.swapaxes(k, -1, -2)) * K ** (-0.5)
        att = jnp.where(mask[None], -jnp.inf, att)
        att = jax.nn.softmax(att, axis=-1)
        v = x @ params["wv1"][hi] @ params["wv2"][hi]
        x = x + att @ v
    return x


if __name__ == "__main__":
    B, S, D, NH = 2, 8, 32, 4          # batch, context_length, embedding_dim, num_heads
    key = jax.random.PRNGKey(0)
    kx, kp = jax.random.split(key)
    x = jax.random.normal(kx, (B, S, D), jnp.float32)
    params = init_params(kp, D, NH)

    out = jax.block_until_ready(multi_head_attention(x, params))
    assert out.shape == (B, S, D)

    ref = reference_jax(x, params)
    # Loose tolerance: kernel matmuls run in bf16 (f32 accumulation), reference is full f32.
    assert jnp.allclose(out, ref, atol=1e-1, rtol=1e-1), "mismatch vs reference"

    print("KERNEL_OK")
</pallas_src>

<mosaic_0001>
module attributes {stable_mosaic.version = 11 : i64} {
  func.func @mha_kernel(%arg0: i32, %arg1: memref<1x8x32xf32, #tpu.memory_space<vmem>>, %arg2: memref<4x32x16xbf16, #tpu.memory_space<vmem>>, %arg3: memref<4x32x32xbf16, #tpu.memory_space<vmem>>, %arg4: memref<1x8x32xf32, #tpu.memory_space<vmem>>) attributes {dimension_semantics = [#tpu.dimension_semantics<parallel>], iteration_bounds = array<i64: 2>, scalar_prefetch = 0 : i64, scratch_operands = 0 : i64, tpu.core_type = #tpu.core_type<tc>, window_params = [{transform_indices = @transform_0, window_bounds = array<i64: 1, 8, 32>}, {pipeline_mode = #tpu.pipeline_mode<synchronous>, transform_indices = @transform_1, window_bounds = array<i64: 4, 32, 16>}, {pipeline_mode = #tpu.pipeline_mode<synchronous>, transform_indices = @transform_2, window_bounds = array<i64: 4, 32, 32>}, {transform_indices = @transform_3, window_bounds = array<i64: 1, 8, 32>}]} {
    %c0 = arith.constant 0 : index
    %c0_0 = arith.constant 0 : index
    %c0_1 = arith.constant 0 : index
    %0 = vector.load %arg1[%c0, %c0_0, %c0_1] : memref<1x8x32xf32, #tpu.memory_space<vmem>>, vector<1x8x32xf32>
    %1 = vector.shape_cast %0 : vector<1x8x32xf32> to vector<8x32xf32>
    %2 = tpu.iota {dimensions = array<i32: 0>} : vector<8x8xi32>
    %3 = tpu.iota {dimensions = array<i32: 1>} : vector<8x8xi32>
    %4 = arith.cmpi sgt, %3, %2 : vector<8x8xi32>
    %cst = arith.constant -1.000000e+30 : f32
    %cst_2 = arith.constant 0.000000e+00 : f32
    %5 = vector.broadcast %cst : f32 to vector<8x8xf32>
    %6 = vector.broadcast %cst_2 : f32 to vector<8x8xf32>
    %7 = arith.select %4, %5, %6 : vector<8x8xi1>, vector<8x8xf32>
    %8 = arith.truncf %1 : vector<8x32xf32> to vector<8x32xbf16>
    %c0_3 = arith.constant 0 : index
    %c0_4 = arith.constant 0 : index
    %c0_5 = arith.constant 0 : index
    %9 = vector.load %arg2[%c0_3, %c0_4, %c0_5] : memref<4x32x16xbf16, #tpu.memory_space<vmem>>, vector<1x32x16xbf16>
    %10 = vector.shape_cast %9 : vector<1x32x16xbf16> to vector<32x16xbf16>
    %cst_6 = arith.constant dense<0.000000e+00> : vector<8x16xf32>
    %11 = tpu.matmul %8, %10, %cst_6 {dimension_numbers = #tpu.dot_dimension_numbers<[1], [0], [0], [1], [0, 0, 1, 1], [], []>} : vector<8x32xbf16>, vector<32x16xbf16>, vector<8x16xf32> -> vector<8x16xf32>
    %12 = vector.extract_strided_slice %11 {offsets = [0, 0], sizes = [8, 8], strides = [1, 1]} : vector<8x16xf32> to vector<8x8xf32>
    %13 = arith.truncf %12 : vector<8x8xf32> to vector<8x8xbf16>
    %14 = vector.extract_strided_slice %11 {offsets = [0, 8], sizes = [8, 8], strides = [1, 1]} : vector<8x16xf32> to vector<8x8xf32>
    %15 = arith.truncf %14 : vector<8x8xf32> to vector<8x8xbf16>
    %16 = tpu.transpose %15, [1, 0] : vector<8x8xbf16> -> vector<8x8xbf16>
    %cst_7 = arith.constant dense<0.000000e+00> : vector<8x8xf32>
    %17 = tpu.matmul %13, %16, %cst_7 {dimension_numbers = #tpu.dot_dimension_numbers<[1], [0], [0], [1], [0, 0, 1, 1], [], []>} : vector<8x8xbf16>, vector<8x8xbf16>, vector<8x8xf32> -> vector<8x8xf32>
    %18 = arith.addf %17, %7 : vector<8x8xf32>
    %cst_8 = arith.constant dense<0xFF800000> : vector<8xf32>
    %19 = vector.multi_reduction <maximumf>, %18, %cst_8 [1] : vector<8x8xf32> to vector<8xf32>
    %20 = vector.shape_cast %19 : vector<8xf32> to vector<8x1xf32>
    %21 = vector.broadcast %20 : vector<8x1xf32> to vector<8x8xf32>
    %22 = arith.subf %18, %21 : vector<8x8xf32>
    %23 = math.exp %22 : vector<8x8xf32>
    %cst_9 = arith.constant dense<0.000000e+00> : vector<8xf32>
    %24 = vector.multi_reduction <add>, %23, %cst_9 [1] : vector<8x8xf32> to vector<8xf32>
    %25 = vector.shape_cast %24 : vector<8xf32> to vector<8x1xf32>
    %c0_10 = arith.constant 0 : index
    %c0_11 = arith.constant 0 : index
    %c0_12 = arith.constant 0 : index
    %26 = vector.load %arg3[%c0_10, %c0_11, %c0_12] : memref<4x32x32xbf16, #tpu.memory_space<vmem>>, vector<1x32x32xbf16>
    %27 = vector.shape_cast %26 : vector<1x32x32xbf16> to vector<32x32xbf16>
    %cst_13 = arith.constant dense<0.000000e+00> : vector<8x32xf32>
    %28 = tpu.matmul %8, %27, %cst_13 {dimension_numbers = #tpu.dot_dimension_numbers<[1], [0], [0], [1], [0, 0, 1, 1], [], []>} : vector<8x32xbf16>, vector<32x32xbf16>, vector<8x32xf32> -> vector<8x32xf32>
    %29 = arith.truncf %23 : vector<8x8xf32> to vector<8x8xbf16>
    %30 = arith.truncf %28 : vector<8x32xf32> to vector<8x32xbf16>
    %cst_14 = arith.constant dense<0.000000e+00> : vector<8x32xf32>
    %31 = tpu.matmul %29, %30, %cst_14 {dimension_numbers = #tpu.dot_dimension_numbers<[1], [0], [0], [1], [0, 0, 1, 1], [], []>} : vector<8x8xbf16>, vector<8x32xbf16>, vector<8x32xf32> -> vector<8x32xf32>
    %32 = tpu.reciprocal %25 {approx = true} : vector<8x1xf32> -> vector<8x1xf32>
    %33 = vector.broadcast %32 : vector<8x1xf32> to vector<8x32xf32>
    %34 = arith.mulf %31, %33 : vector<8x32xf32>
    %35 = arith.addf %1, %34 : vector<8x32xf32>
    %36 = arith.truncf %35 : vector<8x32xf32> to vector<8x32xbf16>
    %c1 = arith.constant 1 : index
    %c0_15 = arith.constant 0 : index
    %c0_16 = arith.constant 0 : index
    %37 = vector.load %arg2[%c1, %c0_15, %c0_16] : memref<4x32x16xbf16, #tpu.memory_space<vmem>>, vector<1x32x16xbf16>
    %38 = vector.shape_cast %37 : vector<1x32x16xbf16> to vector<32x16xbf16>
    %cst_17 = arith.constant dense<0.000000e+00> : vector<8x16xf32>
    %39 = tpu.matmul %36, %38, %cst_17 {dimension_numbers = #tpu.dot_dimension_numbers<[1], [0], [0], [1], [0, 0, 1, 1], [], []>} : vector<8x32xbf16>, vector<32x16xbf16>, vector<8x16xf32> -> vector<8x16xf32>
    %40 = vector.extract_strided_slice %39 {offsets = [0, 0], sizes = [8, 8], strides = [1, 1]} : vector<8x16xf32> to vector<8x8xf32>
    %41 = arith.truncf %40 : vector<8x8xf32> to vector<8x8xbf16>
    %42 = vector.extract_strided_slice %39 {offsets = [0, 8], sizes = [8, 8], strides = [1, 1]} : vector<8x16xf32> to vector<8x8xf32>
    %43 = arith.truncf %42 : vector<8x8xf32> to vector<8x8xbf16>
    %44 = tpu.transpose %43, [1, 0] : vector<8x8xbf16> -> vector<8x8xbf16>
    %cst_18 = arith.constant dense<0.000000e+00> : vector<8x8xf32>
    %45 = tpu.matmul %41, %44, %cst_18 {dimension_numbers = #tpu.dot_dimension_numbers<[1], [0], [0], [1], [0, 0, 1, 1], [], []>} : vector<8x8xbf16>, vector<8x8xbf16>, vector<8x8xf32> -> vector<8x8xf32>
    %46 = arith.addf %45, %7 : vector<8x8xf32>
    %cst_19 = arith.constant dense<0xFF800000> : vector<8xf32>
    %47 = vector.multi_reduction <maximumf>, %46, %cst_19 [1] : vector<8x8xf32> to vector<8xf32>
    %48 = vector.shape_cast %47 : vector<8xf32> to vector<8x1xf32>
    %49 = vector.broadcast %48 : vector<8x1xf32> to vector<8x8xf32>
    %50 = arith.subf %46, %49 : vector<8x8xf32>
    %51 = math.exp %50 : vector<8x8xf32>
    %cst_20 = arith.constant dense<0.000000e+00> : vector<8xf32>
    %52 = vector.multi_reduction <add>, %51, %cst_20 [1] : vector<8x8xf32> to vector<8xf32>
    %53 = vector.shape_cast %52 : vector<8xf32> to vector<8x1xf32>
    %c1_21 = arith.constant 1 : index
    %c0_22 = arith.constant 0 : index
    %c0_23 = arith.constant 0 : index
    %54 = vector.load %arg3[%c1_21, %c0_22, %c0_23] : memref<4x32x32xbf16, #tpu.memory_space<vmem>>, vector<1x32x32xbf16>
    %55 = vector.shape_cast %54 : vector<1x32x32xbf16> to vector<32x32xbf16>
    %cst_24 = arith.constant dense<0.000000e+00> : vector<8x32xf32>
    %56 = tpu.matmul %36, %55, %cst_24 {dimension_numbers = #tpu.dot_dimension_numbers<[1], [0], [0], [1], [0, 0, 1, 1], [], []>} : vector<8x32xbf16>, vector<32x32xbf16>, vector<8x32xf32> -> vector<8x32xf32>
    %57 = arith.truncf %51 : vector<8x8xf32> to vector<8x8xbf16>
    %58 = arith.truncf %56 : vector<8x32xf32> to vector<8x32xbf16>
    %cst_25 = arith.constant dense<0.000000e+00> : vector<8x32xf32>
    %59 = tpu.matmul %57, %58, %cst_25 {dimension_numbers = #tpu.dot_dimension_numbers<[1], [0], [0], [1], [0, 0, 1, 1], [], []>} : vector<8x8xbf16>, vector<8x32xbf16>, vector<8x32xf32> -> vector<8x32xf32>
    %60 = tpu.reciprocal %53 {approx = true} : vector<8x1xf32> -> vector<8x1xf32>
    %61 = vector.broadcast %60 : vector<8x1xf32> to vector<8x32xf32>
    %62 = arith.mulf %59, %61 : vector<8x32xf32>
    %63 = arith.addf %35, %62 : vector<8x32xf32>
    %64 = arith.truncf %63 : vector<8x32xf32> to vector<8x32xbf16>
    %c2 = arith.constant 2 : index
    %c0_26 = arith.constant 0 : index
    %c0_27 = arith.constant 0 : index
    %65 = vector.load %arg2[%c2, %c0_26, %c0_27] : memref<4x32x16xbf16, #tpu.memory_space<vmem>>, vector<1x32x16xbf16>
    %66 = vector.shape_cast %65 : vector<1x32x16xbf16> to vector<32x16xbf16>
    %cst_28 = arith.constant dense<0.000000e+00> : vector<8x16xf32>
    %67 = tpu.matmul %64, %66, %cst_28 {dimension_numbers = #tpu.dot_dimension_numbers<[1], [0], [0], [1], [0, 0, 1, 1], [], []>} : vector<8x32xbf16>, vector<32x16xbf16>, vector<8x16xf32> -> vector<8x16xf32>
    %68 = vector.extract_strided_slice %67 {offsets = [0, 0], sizes = [8, 8], strides = [1, 1]} : vector<8x16xf32> to vector<8x8xf32>
    %69 = arith.truncf %68 : vector<8x8xf32> to vector<8x8xbf16>
    %70 = vector.extract_strided_slice %67 {offsets = [0, 8], sizes = [8, 8], strides = [1, 1]} : vector<8x16xf32> to vector<8x8xf32>
    %71 = arith.truncf %70 : vector<8x8xf32> to vector<8x8xbf16>
    %72 = tpu.transpose %71, [1, 0] : vector<8x8xbf16> -> vector<8x8xbf16>
    %cst_29 = arith.constant dense<0.000000e+00> : vector<8x8xf32>
    %73 = tpu.matmul %69, %72, %cst_29 {dimension_numbers = #tpu.dot_dimension_numbers<[1], [0], [0], [1], [0, 0, 1, 1], [], []>} : vector<8x8xbf16>, vector<8x8xbf16>, vector<8x8xf32> -> vector<8x8xf32>
    %74 = arith.addf %73, %7 : vector<8x8xf32>
    %cst_30 = arith.constant dense<0xFF800000> : vector<8xf32>
    %75 = vector.multi_reduction <maximumf>, %74, %cst_30 [1] : vector<8x8xf32> to vector<8xf32>
    %76 = vector.shape_cast %75 : vector<8xf32> to vector<8x1xf32>
    %77 = vector.broadcast %76 : vector<8x1xf32> to vector<8x8xf32>
    %78 = arith.subf %74, %77 : vector<8x8xf32>
    %79 = math.exp %78 : vector<8x8xf32>
    %cst_31 = arith.constant dense<0.000000e+00> : vector<8xf32>
    %80 = vector.multi_reduction <add>, %79, %cst_31 [1] : vector<8x8xf32> to vector<8xf32>
    %81 = vector.shape_cast %80 : vector<8xf32> to vector<8x1xf32>
    %c2_32 = arith.constant 2 : index
    %c0_33 = arith.constant 0 : index
    %c0_34 = arith.constant 0 : index
    %82 = vector.load %arg3[%c2_32, %c0_33, %c0_34] : memref<4x32x32xbf16, #tpu.memory_space<vmem>>, vector<1x32x32xbf16>
    %83 = vector.shape_cast %82 : vector<1x32x32xbf16> to vector<32x32xbf16>
    %cst_35 = arith.constant dense<0.000000e+00> : vector<8x32xf32>
    %84 = tpu.matmul %64, %83, %cst_35 {dimension_numbers = #tpu.dot_dimension_numbers<[1], [0], [0], [1], [0, 0, 1, 1], [], []>} : vector<8x32xbf16>, vector<32x32xbf16>, vector<8x32xf32> -> vector<8x32xf32>
    %85 = arith.truncf %79 : vector<8x8xf32> to vector<8x8xbf16>
    %86 = arith.truncf %84 : vector<8x32xf32> to vector<8x32xbf16>
    %cst_36 = arith.constant dense<0.000000e+00> : vector<8x32xf32>
    %87 = tpu.matmul %85, %86, %cst_36 {dimension_numbers = #tpu.dot_dimension_numbers<[1], [0], [0], [1], [0, 0, 1, 1], [], []>} : vector<8x8xbf16>, vector<8x32xbf16>, vector<8x32xf32> -> vector<8x32xf32>
    %88 = tpu.reciprocal %81 {approx = true} : vector<8x1xf32> -> vector<8x1xf32>
    %89 = vector.broadcast %88 : vector<8x1xf32> to vector<8x32xf32>
    %90 = arith.mulf %87, %89 : vector<8x32xf32>
    %91 = arith.addf %63, %90 : vector<8x32xf32>
    %92 = arith.truncf %91 : vector<8x32xf32> to vector<8x32xbf16>
    %c3 = arith.constant 3 : index
    %c0_37 = arith.constant 0 : index
    %c0_38 = arith.constant 0 : index
    %93 = vector.load %arg2[%c3, %c0_37, %c0_38] : memref<4x32x16xbf16, #tpu.memory_space<vmem>>, vector<1x32x16xbf16>
    %94 = vector.shape_cast %93 : vector<1x32x16xbf16> to vector<32x16xbf16>
    %cst_39 = arith.constant dense<0.000000e+00> : vector<8x16xf32>
    %95 = tpu.matmul %92, %94, %cst_39 {dimension_numbers = #tpu.dot_dimension_numbers<[1], [0], [0], [1], [0, 0, 1, 1], [], []>} : vector<8x32xbf16>, vector<32x16xbf16>, vector<8x16xf32> -> vector<8x16xf32>
    %96 = vector.extract_strided_slice %95 {offsets = [0, 0], sizes = [8, 8], strides = [1, 1]} : vector<8x16xf32> to vector<8x8xf32>
    %97 = arith.truncf %96 : vector<8x8xf32> to vector<8x8xbf16>
    %98 = vector.extract_strided_slice %95 {offsets = [0, 8], sizes = [8, 8], strides = [1, 1]} : vector<8x16xf32> to vector<8x8xf32>
    %99 = arith.truncf %98 : vector<8x8xf32> to vector<8x8xbf16>
    %100 = tpu.transpose %99, [1, 0] : vector<8x8xbf16> -> vector<8x8xbf16>
    %cst_40 = arith.constant dense<0.000000e+00> : vector<8x8xf32>
    %101 = tpu.matmul %97, %100, %cst_40 {dimension_numbers = #tpu.dot_dimension_numbers<[1], [0], [0], [1], [0, 0, 1, 1], [], []>} : vector<8x8xbf16>, vector<8x8xbf16>, vector<8x8xf32> -> vector<8x8xf32>
    %102 = arith.addf %101, %7 : vector<8x8xf32>
    %cst_41 = arith.constant dense<0xFF800000> : vector<8xf32>
    %103 = vector.multi_reduction <maximumf>, %102, %cst_41 [1] : vector<8x8xf32> to vector<8xf32>
    %104 = vector.shape_cast %103 : vector<8xf32> to vector<8x1xf32>
    %105 = vector.broadcast %104 : vector<8x1xf32> to vector<8x8xf32>
    %106 = arith.subf %102, %105 : vector<8x8xf32>
    %107 = math.exp %106 : vector<8x8xf32>
    %cst_42 = arith.constant dense<0.000000e+00> : vector<8xf32>
    %108 = vector.multi_reduction <add>, %107, %cst_42 [1] : vector<8x8xf32> to vector<8xf32>
    %109 = vector.shape_cast %108 : vector<8xf32> to vector<8x1xf32>
    %c3_43 = arith.constant 3 : index
    %c0_44 = arith.constant 0 : index
    %c0_45 = arith.constant 0 : index
    %110 = vector.load %arg3[%c3_43, %c0_44, %c0_45] : memref<4x32x32xbf16, #tpu.memory_space<vmem>>, vector<1x32x32xbf16>
    %111 = vector.shape_cast %110 : vector<1x32x32xbf16> to vector<32x32xbf16>
    %cst_46 = arith.constant dense<0.000000e+00> : vector<8x32xf32>
    %112 = tpu.matmul %92, %111, %cst_46 {dimension_numbers = #tpu.dot_dimension_numbers<[1], [0], [0], [1], [0, 0, 1, 1], [], []>} : vector<8x32xbf16>, vector<32x32xbf16>, vector<8x32xf32> -> vector<8x32xf32>
    %113 = arith.truncf %107 : vector<8x8xf32> to vector<8x8xbf16>
    %114 = arith.truncf %112 : vector<8x32xf32> to vector<8x32xbf16>
    %cst_47 = arith.constant dense<0.000000e+00> : vector<8x32xf32>
    %115 = tpu.matmul %113, %114, %cst_47 {dimension_numbers = #tpu.dot_dimension_numbers<[1], [0], [0], [1], [0, 0, 1, 1], [], []>} : vector<8x8xbf16>, vector<8x32xbf16>, vector<8x32xf32> -> vector<8x32xf32>
    %116 = tpu.reciprocal %109 {approx = true} : vector<8x1xf32> -> vector<8x1xf32>
    %117 = vector.broadcast %116 : vector<8x1xf32> to vector<8x32xf32>
    %118 = arith.mulf %115, %117 : vector<8x32xf32>
    %119 = arith.addf %91, %118 : vector<8x32xf32>
    %c0_48 = arith.constant 0 : index
    %c0_49 = arith.constant 0 : index
    %c0_50 = arith.constant 0 : index
    %120 = vector.load %arg4[%c0_48, %c0_49, %c0_50] : memref<1x8x32xf32, #tpu.memory_space<vmem>>, vector<1x8x32xf32>
    %121 = vector.shape_cast %120 : vector<1x8x32xf32> to vector<8x32xf32>
    %122 = vector.shape_cast %119 : vector<8x32xf32> to vector<1x8x32xf32>
    tpu.vector_store %arg4[%c0_48, %c0_49, %c0_50], %122 {strides = array<i32>} : memref<1x8x32xf32, #tpu.memory_space<vmem>>, vector<1x8x32xf32>,
    return
  }
  func.func @transform_0(%arg0: i32) -> (i32, i32, i32) {
    %c0_i32 = arith.constant 0 : i32
    %c0_i32_0 = arith.constant 0 : i32
    %c0_i32_1 = arith.constant 0 : i32
    return %arg0, %c0_i32, %c0_i32_0 : i32, i32, i32
  }
  func.func @transform_1(%arg0: i32) -> (i32, i32, i32) {
    %c0_i32 = arith.constant 0 : i32
    %c0_i32_0 = arith.constant 0 : i32
    %c0_i32_1 = arith.constant 0 : i32
    %c0_i32_2 = arith.constant 0 : i32
    return %c0_i32, %c0_i32_0, %c0_i32_1 : i32, i32, i32
  }
  func.func @transform_2(%arg0: i32) -> (i32, i32, i32) {
    %c0_i32 = arith.constant 0 : i32
    %c0_i32_0 = arith.constant 0 : i32
    %c0_i32_1 = arith.constant 0 : i32
    %c0_i32_2 = arith.constant 0 : i32
    return %c0_i32, %c0_i32_0, %c0_i32_1 : i32, i32, i32
  }
  func.func @transform_3(%arg0: i32) -> (i32, i32, i32) {
    %c0_i32 = arith.constant 0 : i32
    %c0_i32_0 = arith.constant 0 : i32
    %c0_i32_1 = arith.constant 0 : i32
    return %arg0, %c0_i32, %c0_i32_0 : i32, i32, i32
  }
}

</mosaic_0001>

<bundles_post_ra>
// kernel: tpu_custom_call.1
= control target key start
LH: loop header
LB: loop body
LE: loop exit
PB: predicated region body
PF: predicated region fallthrough
CT: control target
= control target key end

     0   :  { %8 = vsyncpa [#allocation3], 0  ;;  %s1180_s0 = inlined_call_operand.vmem [shape: f32[2,8,32], index: 0, kind: input, shape index: {}]   ;;  %s1181_s1 = inlined_call_operand.vmem [shape: bf16[4,32,16], index: 1, kind: input, shape index: {}]   ;;  %s1182_s2 = inlined_call_operand.vmem [shape: bf16[4,32,32], index: 2, kind: input, shape index: {}]   ;;  %s1183_s3 = inlined_call_operand.hbm [shape: f32[2,8,32], index: 3, kind: output, shape index: {}]  }
   0x1   :  { %10 = vsyncpa [#allocation3 + $0x1], 0  ;;  %s1004_s12 = smov 0   ;;  %s1006_s13 = smov 0  }
   0x2   :  { %s1008_s14 = smov 0   ;;  %s1010_s15 = smov 0  }
   0x3 LB: > { %s1025_s16 = sadd.s32 4294967295, %s980_s15   ;;  %s731_s17 = sadd.s32 4294967294, %s980_s15   ;;  %s980_s15 = sphi %s1010_s15, %s1189_s15   ;;  %s976_s14 = sphi %s1008_s14, %s1188_s14   ;;  %s972_s13 = sphi %s1006_s13, %s1187_s13   ;;  %s968_s12 = sphi %s1004_s12, %s1186_s12  }
   0x4   : > { %s1029_s18 = sadd.s32 1, %s980_s15   ;;  %s91_s19 = sadd.s32 1, %s976_s14 }
   0x5   : > { %s88_s20 = ssub.s32 %s980_s15, %s1029_s18  ;;  %p101_p0 = scmp.ne.s32.totalorder %s976_s14, %s972_s13 }
   0x6   : > { %p89_p1 = scmp.eq.s32.totalorder %s88_s20, 0  ;;  %p102_p2 = scmp.eq.s32.totalorder %s1025_s16, 1 }
   0x7   : > { %p107_p3 = scmp.ne.s32.totalorder %s972_s13, %s968_s12  ;;  %p108_p4 = scmp.eq.s32.totalorder %s731_s17, 1 }
   0x8   : > { %s1040_s21 = scalar_select %p89_p1, %s976_s14, %s91_s19  }
   0x9   : > { %p1042_p5 = por %p102_p2, %p101_p0  ;;  %p1046_p6 = por %p108_p4, %p107_p3 }
   0xa   : > { %p734_p7 = scmp.ge.s32.totalorder %s980_s15, 1  ;;  %p139_p8 = scmp.lt.s32.totalorder %s980_s15, 3 }
   0xc   : > { %p140_p9 = pnand %p734_p7, %p139_p8 }
   0xd   : > { %p162_p10 = scmp.lt.s32.totalorder (!%p140_p9), %s1025_s16, 1  ;;  %s982_s6 = smov (!%p140_p9), 120  }
   0xe   : > { %143 = sbr.rel (%p140_p9) target bundleno = 2611 (0xa33), region = 32  ;;  %s938_s19 = scalar_lea.hbm (!%p140_p9), %s1183_s3, 16 }
  0x13   : > { %v846_v0 = vld [vmem:[%s1181_s1 + $0x8] sm:$0xff]  ;;  %v845_v1 = vld [vmem:[%s1181_s1] sm:$0xff]  ;;  %s163_s28 = scalar_select %p162_p10, %s1025_s16, 1  ;;  %vm191_vm0 = vcmask 261120   ;;  %vm212_vm1 = vcmask 64512   ;;  %v168_v12 = vlaneseq  ;;  %v983_v16 = vmov 0.0  }
  0x14   : > { %201 = vmatpush.bf16.msra.mxu0 %v846_v0  ;;  %v848_v7 = vld [vmem:[%s1182_s2 + $0x8] sm:$0xff]  ;;  %v847_v8 = vld [vmem:[%s1182_s2] sm:$0xff]  ;;  %vm275_vm3 = vcmask 1043456   ;;  %v850_v30 = vld [vmem:[%s1181_s1 + $0x18] sm:$0xff] }
  0x15   : > { %s736_s29 = sshll.u32 %s163_s28, 3  ;;  %263 = vmatpush.bf16.msra.mxu2 %v848_v7  ;;  %v169_v13 = vshrl.u32 %v168_v12, 7  ;;  %v171_v14 = vand.u32 127, %v168_v12  ;;  %v852_v31 = vld [vmem:[%s1182_s2 + $0x18] sm:$0xff]  ;;  %v849_v32 = vld [vmem:[%s1181_s1 + $0x10] sm:$0xff]  ;;  %v854_v60 = vld [vmem:[%s1181_s1 + $0x28] sm:$0xff] }
  0x16   : > { %s165_s5 = scalar_lea.vmem %s1180_s0, %s736_s29  ;;  %v851_v33 = vld [vmem:[%s1182_s2 + $0x10] sm:$0xff]  ;;  %v856_v61 = vld [vmem:[%s1182_s2 + $0x28] sm:$0xff]  ;;  %v853_v62 = vld [vmem:[%s1181_s1 + $0x20] sm:$0xff]  ;;  %s842_s28 = sshll.u32 %s1025_s16, 3 }
  0x17   : > { %v167_v2 = vld [vmem:[%s165_s5] sm:$0xff]  ;;  %vm172_vm2 = vcmp.gt.s32.totalorder %v171_v14, %v169_v13  ;;  %s667_s4 = scalar_lea.hbm %s1183_s3, %s842_s28 }
  0x18   : > { %202 = vmatpush.bf16.msra.mxu0 %v845_v1  ;;  %v174_v3 = vpack.c.bf16 %v167_v2, %v167_v2  ;;  %v1074_v17 = vsel %vm172_vm2, -1e+30, %v983_v16  ;;  %v855_v63 = vld [vmem:[%s1182_s2 + $0x20] sm:$0xff]  ;;  %s671_s8 = sshll.u32 %s667_s4, 4  ;;  %s672_s8 = int_to_ptr.hbm [resolvable:$true] %s671_s8 }
  0x19   : > { %264 = vmatpush.bf16.msra.mxu2 %v847_v8  ;;  %s932_s10 = sshra.s32 %s672_s8, 4  ;;  %s933_s10 = int_to_ptr.hbm [resolvable:$true] %s932_s10 }
  0x1a   : > { %s934_s16 = scalar_lea.hbm %s933_s10, 8  ;;  %p939_p0 = scmp.lt.s32.totalorder %s933_s10, %s1183_s3 }
  0x1b   : > { %745 = vmatmul.msk.bf16.vlgmr.msra.gmra.mxu0 %vm191_vm0, %v174_v3  ;;  %p935_p11 = scmp.ne.s32.totalorder %s933_s10, %s934_s16  ;;  %p940_p1 = scmp.lt.s32.totalorder %s938_s19, %s934_s16 }
  0x1c   : > { %755 = vmatmul.msk.bf16.vlgmr.msra.gmra.mxu2 %vm191_vm0, %v174_v3 }
  0x1d   : > { %p936_p12 = pnand %p935_p11, %p1042_p5  ;;  %p941_p2 = por %p940_p1, %p939_p0 }
  0x1f   : > { %p937_p13 = pneg %p936_p12 }
  0x21   : > { %p942_p3 = pnand %p941_p2, %p937_p13 }
  0x98   : > { %v204_v4 = vpop.f32.mrf.mxu0 }
  0x99   : > { %v208_v5 = vpack.c.bf16 %v204_v4, %v204_v4 }
  0x9b   : > { %210 = vrot.lane.b32.xlu0 %v208_v5, %s982_s6 }
  0x9f   : > { %v266_v11 = vpop.f32.mrf.mxu2 }
  0xa0   : > { %v206_v6 = vpop.f32.mrf.mxu0  ;;  %v271_v22 = vpack.c.bf16 %v266_v11, %v266_v11 }
  0xa2   : > { %v277_v23 = vsel %vm275_vm3, %v271_v22, 0 }
  0xa3   : > { %286 = vmatpush.bf16.msra.mxu3 %v277_v23 }
  0xa7   : > { %v268_v15 = vpop.f32.mrf.mxu2  ;;  %322 = vmatpush.bf16.msrb.mxu3 %v850_v30  ;;  %v859_v30 = vld [vmem:[%s1182_s2 + $0x30] sm:$0xff] }
  0xab   : > { %323 = vmatpush.bf16.msrb.mxu3 %v849_v32 }
 0x10d   : > { %v211_v9 = vpop.permute.xlu0 %210 }
 0x10e   : > { %v217_v10 = vsel %vm212_vm1, %v211_v9, 0 }
 0x10f   : > { %226 = vmatpush.bf16.xpose.msra.mxu1 %v217_v10 }
 0x116   : > { %746 = vmatmul.msk.bf16.vlgmr.msra.gmra.mxu1 %vm212_vm1, %v208_v5 }
 0x117   : > { %384 = vmatpush.bf16.msrb.mxu1 %v852_v31 }
 0x11b   : > { %385 = vmatpush.bf16.msrb.mxu1 %v851_v33 }
 0x11f   : > { %504 = vmatpush.bf16.msra.mxu1 %v856_v61 }
 0x123   : > { %505 = vmatpush.bf16.msra.mxu1 %v855_v63 }
 0x193   : > { %v228_v18 = vpop.f32.mrf.mxu1 }
 0x194   : > { %v229_v19 = vadd.f32 %v228_v18, %v1074_v17 }
 0x196   : > { %v232_v20 = vsel %vm212_vm1, %v229_v19, -inf }
 0x197   : > { %233 = vmax.xlane.f32.xlu0 %v232_v20 }
 0x19b   : > { %v230_v21 = vpop.f32.mrf.mxu1 }
 0x20a   : > { %v234_v24 = vpop.xlane.xlu0 %233 }
 0x20b   : > { %v235_v25 = vsub.f32 %v229_v19, %v234_v24 }
 0x20d   : > { %v236_v26 = vmul.f32 1.442695, %v235_v25 }
 0x20f   : > { %902 = vpow2.f32 %v236_v26 }
 0x215   : > { %v903_v27 = vpop.eup %902 }
 0x216   : > { %v238_v28 = vsel %vm212_vm1, %v903_v27, 0.0  ;;  %v270_v29 = vpack.c.bf16 %v903_v27, %v903_v27  ;;  %v858_v27 = vld [vmem:[%s1181_s1 + $0x38] sm:$0xff] }
 0x217   : > { %239 = vadd.xlane.f32.xlu1 %v238_v28  ;;  %v860_v28 = vld [vmem:[%s1182_s2 + $0x38] sm:$0xff] }
 0x218   : > { %756 = vmatmul.msk.bf16.vlgmr.msra.gmra.mxu3 %vm212_vm1, %v270_v29  ;;  %v857_v29 = vld [vmem:[%s1181_s1 + $0x30] sm:$0xff] }
 0x219   : > { %442 = vmatpush.bf16.msra.mxu3 %v854_v60 }
 0x21d   : > { %443 = vmatpush.bf16.msra.mxu3 %v853_v62 }
 0x28a   : > { %v240_v34 = vpop.xlane.xlu1 %239 }
 0x28b   : > { %904 = vrcp.f32 %v240_v34 }
 0x291   : > { %v905_v35 = vpop.eup %904 }
 0x29b   : > { %v288_v36 = vpop.f32.mrf.mxu3 }
 0x29c   : > { %v293_v37 = vmul.f32 %v905_v35, %v288_v36 }
 0x29e   : > { %v294_v38 = vadd.f32 %v293_v37, %v167_v2 }
 0x2a0   : > { %v295_v39 = vpack.c.bf16 %v294_v38, %v294_v38 }
 0x2a2   : > { %769 = vmatmul.msk.bf16.vlgmr.msrb.gmra.mxu3 %vm191_vm0, %v295_v39  ;;  %783 = vmatmul.msk.bf16.vlgmr.msrb.gmra.mxu1 %vm191_vm0, %v295_v39 }
 0x2a3   : > { %v290_v40 = vpop.f32.mrf.mxu3  ;;  %562 = vmatpush.bf16.msrb.mxu3 %v858_v27  ;;  %624 = vmatpush.bf16.msrb.mxu1 %v860_v28 }
 0x2a7   : > { %563 = vmatpush.bf16.msrb.mxu3 %v857_v29  ;;  %625 = vmatpush.bf16.msrb.mxu1 %v859_v30 }
 0x31f   : > { %v387_v41 = vpop.f32.mrf.mxu1 }
 0x320   : > { %v392_v42 = vpack.c.bf16 %v387_v41, %v387_v41 }
 0x322   : > { %v397_v43 = vsel %vm275_vm3, %v392_v42, 0 }
 0x323   : > { %406 = vmatpush.bf16.msrb.mxu2 %v397_v43 }
 0x325   : > { %v325_v44 = vpop.f32.mrf.mxu3 }
 0x326   : > { %v329_v45 = vpack.c.bf16 %v325_v44, %v325_v44 }
 0x327   : > { %v389_v46 = vpop.f32.mrf.mxu1 }
 0x328   : > { %331 = vrot.lane.b32.xlu1 %v329_v45, %s982_s6 }
 0x32d   : > { %v327_v47 = vpop.f32.mrf.mxu3 }
 0x39a   : > { %v332_v48 = vpop.permute.xlu1 %331 }
 0x39b   : > { %v337_v49 = vsel %vm212_vm1, %v332_v48, 0 }
 0x39c   : > { %346 = vmatpush.bf16.xpose.msrb.mxu0 %v337_v49 }
 0x3a3   : > { %770 = vmatmul.msk.bf16.vlgmr.msrb.gmra.mxu0 %vm212_vm1, %v329_v45 }
 0x420   : > { %v348_v50 = vpop.f32.mrf.mxu0 }
 0x421   : > { %v349_v51 = vadd.f32 %v348_v50, %v1074_v17 }
 0x423   : > { %v352_v52 = vsel %vm212_vm1, %v349_v51, -inf }
 0x424   : > { %353 = vmax.xlane.f32.xlu2 %v352_v52 }
 0x428   : > { %v350_v53 = vpop.f32.mrf.mxu0 }
 0x497   : > { %v354_v54 = vpop.xlane.xlu2 %353 }
 0x498   : > { %v355_v55 = vsub.f32 %v349_v51, %v354_v54 }
 0x49a   : > { %v356_v56 = vmul.f32 1.442695, %v355_v55 }
 0x49c   : > { %906 = vpow2.f32 %v356_v56 }
 0x4a2   : > { %v907_v57 = vpop.eup %906 }
 0x4a3   : > { %v358_v58 = vsel %vm212_vm1, %v907_v57, 0.0  ;;  %v391_v59 = vpack.c.bf16 %v907_v57, %v907_v57 }
 0x4a4   : > { %359 = vadd.xlane.f32.xlu2 %v358_v58 }
 0x4a5   : > { %784 = vmatmul.msk.bf16.vlgmr.msrb.gmra.mxu2 %vm212_vm1, %v391_v59 }
 0x517   : > { %v360_v0 = vpop.xlane.xlu2 %359 }
 0x518   : > { %908 = vrcp.f32 %v360_v0 }
 0x51e   : > { %v909_v1 = vpop.eup %908 }
 0x528   : > { %v408_v2 = vpop.f32.mrf.mxu2 }
 0x529   : > { %v413_v3 = vmul.f32 %v909_v1, %v408_v2 }
 0x52b   : > { %v414_v4 = vadd.f32 %v413_v3, %v294_v38 }
 0x52d   : > { %v415_v5 = vpack.c.bf16 %v414_v4, %v414_v4 }
 0x52f   : > { %797 = vmatmul.msk.bf16.vlgmr.msra.gmra.mxu3 %vm191_vm0, %v415_v5  ;;  %811 = vmatmul.msk.bf16.vlgmr.msra.gmra.mxu1 %vm191_vm0, %v415_v5 }
 0x530   : > { %v410_v6 = vpop.f32.mrf.mxu2 }
 0x5ac   : > { %v507_v7 = vpop.f32.mrf.mxu1 }
 0x5ad   : > { %v512_v8 = vpack.c.bf16 %v507_v7, %v507_v7 }
 0x5af   : > { %v517_v9 = vsel %vm275_vm3, %v512_v8, 0 }
 0x5b0   : > { %526 = vmatpush.bf16.msra.mxu2 %v517_v9 }
 0x5b2   : > { %v445_v10 = vpop.f32.mrf.mxu3 }
 0x5b3   : > { %v449_v11 = vpack.c.bf16 %v445_v10, %v445_v10 }
 0x5b4   : > { %v509_v12 = vpop.f32.mrf.mxu1 }
 0x5b5   : > { %451 = vrot.lane.b32.xlu2 %v449_v11, %s982_s6 }
 0x5ba   : > { %v447_v13 = vpop.f32.mrf.mxu3 }
 0x60f   : > { %v452_v14 = vpop.permute.xlu2 %451 }
 0x610   : > { %v457_v15 = vsel %vm212_vm1, %v452_v14, 0 }
 0x611   : > { %466 = vmatpush.bf16.xpose.msra.mxu0 %v457_v15 }
 0x618   : > { %798 = vmatmul.msk.bf16.vlgmr.msra.gmra.mxu0 %vm212_vm1, %v449_v11 }
 0x695   : > { %v468_v16 = vpop.f32.mrf.mxu0 }
 0x696   : > { %v469_v18 = vadd.f32 %v468_v16, %v1074_v17 }
 0x698   : > { %v472_v19 = vsel %vm212_vm1, %v469_v18, -inf }
 0x699   : > { %473 = vmax.xlane.f32.xlu1 %v472_v19 }
 0x69d   : > { %v470_v20 = vpop.f32.mrf.mxu0 }
 0x70c   : > { %v474_v21 = vpop.xlane.xlu1 %473 }
 0x70d   : > { %v475_v22 = vsub.f32 %v469_v18, %v474_v21 }
 0x70f   : > { %v476_v23 = vmul.f32 1.442695, %v475_v22 }
 0x711   : > { %910 = vpow2.f32 %v476_v23 }
 0x717   : > { %v911_v24 = vpop.eup %910 }
 0x718   : > { %v511_v25 = vpack.c.bf16 %v911_v24, %v911_v24  ;;  %v478_v26 = vsel %vm212_vm1, %v911_v24, 0.0 }
 0x719   : > { %479 = vadd.xlane.f32.xlu2 %v478_v26 }
 0x71a   : > { %812 = vmatmul.msk.bf16.vlgmr.msra.gmra.mxu2 %vm212_vm1, %v511_v25 }
 0x78c   : > { %v480_v31 = vpop.xlane.xlu2 %479 }
 0x78d   : > { %912 = vrcp.f32 %v480_v31 }
 0x793   : > { %v913_v32 = vpop.eup %912 }
 0x79d   : > { %v528_v33 = vpop.f32.mrf.mxu2 }
 0x79e   : > { %v533_v34 = vmul.f32 %v913_v32, %v528_v33 }
 0x7a0   : > { %v534_v35 = vadd.f32 %v533_v34, %v414_v4 }
 0x7a2   : > { %v535_v36 = vpack.c.bf16 %v534_v35, %v534_v35 }
 0x7a4   : > { %825 = vmatmul.msk.bf16.vlgmr.msrb.gmra.mxu3 %vm191_vm0, %v535_v36  ;;  %839 = vmatmul.msk.bf16.vlgmr.msrb.gmra.mxu1 %vm191_vm0, %v535_v36 }
 0x7a5   : > { %v530_v37 = vpop.f32.mrf.mxu2 }
 0x821   : > { %v627_v38 = vpop.f32.mrf.mxu1 }
 0x822   : > { %v632_v39 = vpack.c.bf16 %v627_v38, %v627_v38 }
 0x824   : > { %v637_v40 = vsel %vm275_vm3, %v632_v39, 0 }
 0x825   : > { %646 = vmatpush.bf16.msrb.mxu2 %v637_v40 }
 0x827   : > { %v565_v41 = vpop.f32.mrf.mxu3 }
 0x828   : > { %v569_v42 = vpack.c.bf16 %v565_v41, %v565_v41 }
 0x829   : > { %v629_v43 = vpop.f32.mrf.mxu1 }
 0x82a   : > { %571 = vrot.lane.b32.xlu0 %v569_v42, %s982_s6  ;;  %s159_s6 = sand.u32 1, %s972_s13  }
 0x82b   : > { %s735_s27 = sshll.u32 %s159_s6, 3  ;;  %s657_s9 = scalar_lea.sflag [#allocation3], %s159_s6 }
 0x82c   : > { %s161_s5 = scalar_lea.vmem [#allocation2], %s735_s27 }
 0x82d   : > { %s669_s7 = sshll.u32 %s161_s5, 4  ;;  %s670_s7 = int_to_ptr.vmem [resolvable:$true] %s669_s7 }
 0x82f   : > { %v567_v44 = vpop.f32.mrf.mxu3 }
 0x89c   : > { %v572_v45 = vpop.permute.xlu0 %571 }
 0x89d   : > { %v577_v46 = vsel %vm212_vm1, %v572_v45, 0 }
 0x89e   : > { %586 = vmatpush.bf16.xpose.msrb.mxu0 %v577_v46 }
 0x8a5   : > { %826 = vmatmul.msk.bf16.vlgmr.msrb.gmra.mxu0 %vm212_vm1, %v569_v42 }
 0x922   : > { %v588_v47 = vpop.f32.mrf.mxu0 }
 0x923   : > { %v589_v48 = vadd.f32 %v588_v47, %v1074_v17 }
 0x925   : > { %v592_v49 = vsel %vm212_vm1, %v589_v48, -inf }
 0x926   : > { %593 = vmax.xlane.f32.xlu0 %v592_v49 }
 0x92a   : > { %v590_v50 = vpop.f32.mrf.mxu0 }
 0x999   : > { %v594_v51 = vpop.xlane.xlu0 %593 }
 0x99a   : > { %v595_v52 = vsub.f32 %v589_v48, %v594_v51 }
 0x99c   : > { %v596_v53 = vmul.f32 1.442695, %v595_v52 }
 0x99e   : > { %914 = vpow2.f32 %v596_v53 }
 0x9a4   : > { %v915_v54 = vpop.eup %914 }
 0x9a5   : > { %v631_v55 = vpack.c.bf16 %v915_v54, %v915_v54  ;;  %v598_v56 = vsel %vm212_vm1, %v915_v54, 0.0 }
 0x9a6   : > { %599 = vadd.xlane.f32.xlu1 %v598_v56 }
 0x9a7   : > { %840 = vmatmul.msk.bf16.vlgmr.msrb.gmra.mxu2 %vm212_vm1, %v631_v55 }
 0xa19   : > { %v600_v57 = vpop.xlane.xlu1 %599 }
 0xa1a   : > { %916 = vrcp.f32 %v600_v57 }
 0xa20   : > { %v917_v17 = vpop.eup %916 }
 0xa2a   : > { %v648_v58 = vpop.f32.mrf.mxu2 }
 0xa2b   : > { %v653_v59 = vmul.f32 %v917_v17, %v648_v58 }
 0xa2d   : > { %v654_v60 = vadd.f32 %v653_v59, %v534_v35 }
 0xa2f   : > { %655 = vst.msk [vmem:[%s161_s5] sm:$0xff] %vm191_vm0, %v654_v60 }
 0xa30   : > { %945 = shalt.err (!%p942_p3)
}
 0xa31   : > { %861 = dma.vmem_to_hbm [thread:$0]  (%p1042_p5), %s670_s7, 128, %s672_s8, %s657_s9  }
 0xa32   : > { %v650_v61 = vpop.f32.mrf.mxu2 }
 0xa33 PF: > { %p867_p4 = scmp.ge.s32.totalorder %s980_s15, 2  ;;  %s683_s25 = sand.u32 1, %s968_s12  }
 0xa34   : > { %s684_s26 = scalar_lea.sflag [#allocation3], %s683_s25 }
 0xa35   : > { %p864_p7 = pnand %p867_p4, %p1046_p6 }
 0xa37   : > { %p865_p8 = pneg %p864_p7 }
 0xa39   : > { %963 = dma.done.wait (%p865_p8), %s684_s26, 128  }
 0xa3a   : > { %965 = vsyncadd (%p865_p8), %s684_s26, 4294967168  ;;  %p13_p9 = scmp.ge.s32.totalorder %s1029_s18, 4   ;;  %s1186_s12 = smov %s972_s13 }
 0xa3b   : > { %s1187_s13 = smov %s976_s14  ;;  %s1188_s14 = smov %s1040_s21 }
 0xa3c   : > { %s1189_s15 = smov %s1029_s18  ;;  %15 = sbr.rel (!%p13_p9) target bundleno = 3 (0x3), region = 73 }
 0xa41   :  { %690 = vsyncpa [#allocation3], 1 }
 0xa42   :  { %692 = vsyncpa [#allocation3 + $0x1], 1 }

</bundles_post_ra>
